<compile_context>
chip_gen: v6e
topology: v6e:2x2x1
jax: 0.10.0
libtpu: 0.0.40
codegen_flags: <defaults>
</compile_context>

<pallas_src>
import functools

import jax
import jax.numpy as jnp
from jax.experimental import pallas as pl
from jax.experimental.pallas import tpu as pltpu

SUBLANE = 8
LANE = 128


def _round_up(n, m):
    return ((n + m - 1) // m) * m


def _cdiv(a, b):
    return (a + b - 1) // b


def _mlp_kernel(x_ref, w1_ref, b1_ref, w2_ref, b2_ref, w3_ref, b3_ref, o_ref):
    # Feature-major: x_ref is (IN_PAD, TB); weights are (out_pad, in_pad);
    # biases are (out_pad, 1) and lane-broadcast against the (out_pad, TB) tiles.
    xt = x_ref[...]
    h1 = jnp.maximum(
        jnp.dot(w1_ref[...], xt, preferred_element_type=jnp.float32) + b1_ref[...], 0.0
    )
    h2 = jnp.maximum(
        jnp.dot(w2_ref[...], h1, preferred_element_type=jnp.float32) + b2_ref[...], 0.0
    )
    y = jnp.dot(w3_ref[...], h2, preferred_element_type=jnp.float32) + b3_ref[...]
    o_ref[...] = y.astype(o_ref.dtype)


def prepare_params(params):
    """One-time prep (outside the hot path): zero-pad (out, in) weights and
    biases up to multiples of 8 sublanes.  No transpose needed — the kernel
    computes h^T = W . x^T directly, and padded rows/cols stay exactly zero
    through the ReLUs, so the sliced result is unchanged."""

    def prep(w, b):
        out_d, in_d = w.shape
        op, ip = _round_up(out_d, SUBLANE), _round_up(in_d, SUBLANE)
        w_pad = jnp.zeros((op, ip), jnp.float32).at[:out_d, :in_d].set(
            w.astype(jnp.float32)
        )
        b_pad = jnp.zeros((op, 1), jnp.float32).at[:out_d, 0].set(b.astype(jnp.float32))
        return w_pad, b_pad

    w1p, b1p = prep(params["w1"], params["b1"])
    w2p, b2p = prep(params["w2"], params["b2"])
    w3p, b3p = prep(params["w3"], params["b3"])
    return {"w1": w1p, "b1": b1p, "w2": w2p, "b2": b2p, "w3": w3p, "b3": b3p}


@functools.partial(jax.jit, static_argnames=("in_features", "out_features", "tb_max"))
def mlp_forward(x, prepped, *, in_features, out_features, tb_max=2048):
    """x: (B, in_features) f32.  prepped: output of prepare_params (arrays only)."""
    B = x.shape[0]
    assert x.shape[1] == in_features

    w1, b1 = prepped["w1"], prepped["b1"]
    w2, b2 = prepped["w2"], prepped["b2"]
    w3, b3 = prepped["w3"], prepped["b3"]
    in_pad = w1.shape[1]
    out_pad = w3.shape[0]

    # Adaptive, 128-aligned batch tiles that evenly split the batch:
    # tail padding is < 128 rows per tile, tiles are as large as possible
    # (<= tb_max lanes) to amortize per-grid-step overhead.
    b128 = _round_up(max(B, 1), LANE)
    n_tiles = _cdiv(b128, tb_max)
    tb = _round_up(_cdiv(b128, n_tiles), LANE)
    b_pad = n_tiles * tb

    # Feature-major activations: x^T padded only 4 -> 8 sublanes (cheap) and
    # batch rounded up to the tile multiple on the lane axis.
    xt = (
        jnp.zeros((in_pad, b_pad), jnp.float32)
        .at[:in_features, :B]
        .set(x.astype(jnp.float32).T)
    )

    # Advisory cost hint for XLA scheduling around the (tiny) custom call.
    flops = 2 * b_pad * (w1.size + w2.size + w3.size)
    bytes_accessed = (
        xt.size * 4
        + b_pad * out_pad * 4
        + (w1.size + w2.size + w3.size + b1.size + b2.size + b3.size) * 4
    )
    cost = pl.CostEstimate(flops=flops, transcendentals=0, bytes_accessed=bytes_accessed)

    const = lambda i: (0, 0)  # weights / biases resident across all batch tiles
    x_spec = pl.BlockSpec((in_pad, tb), lambda i: (0, i))
    o_spec = pl.BlockSpec((out_pad, tb), lambda i: (0, i))

    out_t = pl.pallas_call(
        _mlp_kernel,
        out_shape=jax.ShapeDtypeStruct((out_pad, b_pad), jnp.float32),
        grid_spec=pltpu.PrefetchScalarGridSpec(
            num_scalar_prefetch=0,
            grid=(n_tiles,),
            in_specs=[
                x_spec,
                pl.BlockSpec(w1.shape, const), pl.BlockSpec(b1.shape, const),
                pl.BlockSpec(w2.shape, const), pl.BlockSpec(b2.shape, const),
                pl.BlockSpec(w3.shape, const), pl.BlockSpec(b3.shape, const),
            ],
            out_specs=o_spec,
        ),
        compiler_params=pltpu.CompilerParams(
            dimension_semantics=("parallel",),
        ),
        cost_estimate=cost,
    )(xt, w1, b1, w2, b2, w3, b3)

    # Static (Python-int) slices -> no tracer-slice error; transpose back.
    return out_t[:out_features, :B].T.astype(x.dtype)


def init_params(key, in_features=4, h1=8, h2=9, out_features=3):
    """Deterministic synthetic init matching nn.Linear shapes (Kaiming-uniform-ish)."""
    ks = jax.random.split(key, 6)

    def lin(kw, kb, fan_in, fan_out):
        bound = 1.0 / jnp.sqrt(fan_in)
        w = jax.random.uniform(kw, (fan_out, fan_in), jnp.float32, -bound, bound)
        b = jax.random.uniform(kb, (fan_out,), jnp.float32, -bound, bound)
        return w, b

    w1, b1 = lin(ks[0], ks[1], in_features, h1)
    w2, b2 = lin(ks[2], ks[3], h1, h2)
    w3, b3 = lin(ks[4], ks[5], h2, out_features)
    return {"w1": w1, "b1": b1, "w2": w2, "b2": b2, "w3": w3, "b3": b3}


def mlp_reference(x, p):
    h = jnp.maximum(x @ p["w1"].T + p["b1"], 0.0)
    h = jnp.maximum(h @ p["w2"].T + p["b2"], 0.0)
    return h @ p["w3"].T + p["b3"]


if __name__ == "__main__":
    key = jax.random.PRNGKey(0)
    k_param, k_x = jax.random.split(key)

    params = init_params(k_param, in_features=4, h1=8, h2=9, out_features=3)
    prepped = prepare_params(params)  # one-time sublane padding of weights/biases

    x = jax.random.normal(k_x, (8, 4), jnp.float32)  # batch=8, in_features=4

    out = jax.block_until_ready(
        mlp_forward(x, prepped, in_features=4, out_features=3)
    )
    ref = mlp_reference(x, params)

    assert out.shape == (8, 3), out.shape
    assert jnp.allclose(out, ref, atol=1e-5, rtol=1e-5), float(jnp.max(jnp.abs(out - ref)))
    print("KERNEL_OK")
</pallas_src>

<mosaic_0001>
module attributes {stable_mosaic.version = 11 : i64} {
  func.func @_mlp_kernel(%arg0: i32, %arg1: memref<8x128xf32, #tpu.memory_space<vmem>>, %arg2: memref<8x8xf32, #tpu.memory_space<vmem>>, %arg3: memref<8x1xf32, #tpu.memory_space<vmem>>, %arg4: memref<16x8xf32, #tpu.memory_space<vmem>>, %arg5: memref<16x1xf32, #tpu.memory_space<vmem>>, %arg6: memref<8x16xf32, #tpu.memory_space<vmem>>, %arg7: memref<8x1xf32, #tpu.memory_space<vmem>>, %arg8: memref<8x128xf32, #tpu.memory_space<vmem>>) attributes {dimension_semantics = [#tpu.dimension_semantics<parallel>], iteration_bounds = array<i64: 1>, scalar_prefetch = 0 : i64, scratch_operands = 0 : i64, tpu.core_type = #tpu.core_type<tc>, window_params = [{transform_indices = @transform_0, window_bounds = array<i64: 8, 128>}, {pipeline_mode = #tpu.pipeline_mode<synchronous>, transform_indices = @transform_1, window_bounds = array<i64: 8, 8>}, {pipeline_mode = #tpu.pipeline_mode<synchronous>, transform_indices = @transform_2, window_bounds = array<i64: 8, 1>}, {pipeline_mode = #tpu.pipeline_mode<synchronous>, transform_indices = @transform_3, window_bounds = array<i64: 16, 8>}, {pipeline_mode = #tpu.pipeline_mode<synchronous>, transform_indices = @transform_4, window_bounds = array<i64: 16, 1>}, {pipeline_mode = #tpu.pipeline_mode<synchronous>, transform_indices = @transform_5, window_bounds = array<i64: 8, 16>}, {pipeline_mode = #tpu.pipeline_mode<synchronous>, transform_indices = @transform_6, window_bounds = array<i64: 8, 1>}, {transform_indices = @transform_7, window_bounds = array<i64: 8, 128>}]} {
    %c0 = arith.constant 0 : index
    %c0_0 = arith.constant 0 : index
    %0 = vector.load %arg1[%c0, %c0_0] : memref<8x128xf32, #tpu.memory_space<vmem>>, vector<8x128xf32>
    %c0_1 = arith.constant 0 : index
    %c0_2 = arith.constant 0 : index
    %1 = vector.load %arg2[%c0_1, %c0_2] : memref<8x8xf32, #tpu.memory_space<vmem>>, vector<8x8xf32>
    %cst = arith.constant dense<0.000000e+00> : vector<8x128xf32>
    %2 = tpu.matmul %1, %0, %cst {dimension_numbers = #tpu.dot_dimension_numbers<[1], [0], [0], [1], [0, 0, 1, 1], [], []>} : vector<8x8xf32>, vector<8x128xf32>, vector<8x128xf32> -> vector<8x128xf32>
    %c0_3 = arith.constant 0 : index
    %c0_4 = arith.constant 0 : index
    %3 = vector.load %arg3[%c0_3, %c0_4] : memref<8x1xf32, #tpu.memory_space<vmem>>, vector<8x1xf32>
    %4 = vector.broadcast %3 : vector<8x1xf32> to vector<8x128xf32>
    %5 = arith.addf %2, %4 : vector<8x128xf32>
    %cst_5 = arith.constant 0.000000e+00 : f32
    %6 = vector.broadcast %cst_5 : f32 to vector<8x128xf32>
    %7 = arith.maximumf %5, %6 : vector<8x128xf32>
    %c0_6 = arith.constant 0 : index
    %c0_7 = arith.constant 0 : index
    %8 = vector.load %arg4[%c0_6, %c0_7] : memref<16x8xf32, #tpu.memory_space<vmem>>, vector<16x8xf32>
    %cst_8 = arith.constant dense<0.000000e+00> : vector<16x128xf32>
    %9 = tpu.matmul %8, %7, %cst_8 {dimension_numbers = #tpu.dot_dimension_numbers<[1], [0], [0], [1], [0, 0, 1, 1], [], []>} : vector<16x8xf32>, vector<8x128xf32>, vector<16x128xf32> -> vector<16x128xf32>
    %c0_9 = arith.constant 0 : index
    %c0_10 = arith.constant 0 : index
    %10 = vector.load %arg5[%c0_9, %c0_10] : memref<16x1xf32, #tpu.memory_space<vmem>>, vector<16x1xf32>
    %11 = vector.broadcast %10 : vector<16x1xf32> to vector<16x128xf32>
    %12 = arith.addf %9, %11 : vector<16x128xf32>
    %cst_11 = arith.constant 0.000000e+00 : f32
    %13 = vector.broadcast %cst_11 : f32 to vector<16x128xf32>
    %14 = arith.maximumf %12, %13 : vector<16x128xf32>
    %c0_12 = arith.constant 0 : index
    %c0_13 = arith.constant 0 : index
    %15 = vector.load %arg6[%c0_12, %c0_13] : memref<8x16xf32, #tpu.memory_space<vmem>>, vector<8x16xf32>
    %cst_14 = arith.constant dense<0.000000e+00> : vector<8x128xf32>
    %16 = tpu.matmul %15, %14, %cst_14 {dimension_numbers = #tpu.dot_dimension_numbers<[1], [0], [0], [1], [0, 0, 1, 1], [], []>} : vector<8x16xf32>, vector<16x128xf32>, vector<8x128xf32> -> vector<8x128xf32>
    %c0_15 = arith.constant 0 : index
    %c0_16 = arith.constant 0 : index
    %17 = vector.load %arg7[%c0_15, %c0_16] : memref<8x1xf32, #tpu.memory_space<vmem>>, vector<8x1xf32>
    %18 = vector.broadcast %17 : vector<8x1xf32> to vector<8x128xf32>
    %19 = arith.addf %16, %18 : vector<8x128xf32>
    %c0_17 = arith.constant 0 : index
    %c0_18 = arith.constant 0 : index
    %20 = vector.load %arg8[%c0_17, %c0_18] : memref<8x128xf32, #tpu.memory_space<vmem>>, vector<8x128xf32>
    tpu.vector_store %arg8[%c0_17, %c0_18], %19 {strides = array<i32>} : memref<8x128xf32, #tpu.memory_space<vmem>>, vector<8x128xf32>,
    return
  }
  func.func @transform_0(%arg0: i32) -> (i32, i32) {
    %c0_i32 = arith.constant 0 : i32
    %c0_i32_0 = arith.constant 0 : i32
    return %c0_i32, %arg0 : i32, i32
  }
  func.func @transform_1(%arg0: i32) -> (i32, i32) {
    %c0_i32 = arith.constant 0 : i32
    %c0_i32_0 = arith.constant 0 : i32
    %c0_i32_1 = arith.constant 0 : i32
    return %c0_i32, %c0_i32_0 : i32, i32
  }
  func.func @transform_2(%arg0: i32) -> (i32, i32) {
    %c0_i32 = arith.constant 0 : i32
    %c0_i32_0 = arith.constant 0 : i32
    %c0_i32_1 = arith.constant 0 : i32
    return %c0_i32, %c0_i32_0 : i32, i32
  }
  func.func @transform_3(%arg0: i32) -> (i32, i32) {
    %c0_i32 = arith.constant 0 : i32
    %c0_i32_0 = arith.constant 0 : i32
    %c0_i32_1 = arith.constant 0 : i32
    return %c0_i32, %c0_i32_0 : i32, i32
  }
  func.func @transform_4(%arg0: i32) -> (i32, i32) {
    %c0_i32 = arith.constant 0 : i32
    %c0_i32_0 = arith.constant 0 : i32
    %c0_i32_1 = arith.constant 0 : i32
    return %c0_i32, %c0_i32_0 : i32, i32
  }
  func.func @transform_5(%arg0: i32) -> (i32, i32) {
    %c0_i32 = arith.constant 0 : i32
    %c0_i32_0 = arith.constant 0 : i32
    %c0_i32_1 = arith.constant 0 : i32
    return %c0_i32, %c0_i32_0 : i32, i32
  }
  func.func @transform_6(%arg0: i32) -> (i32, i32) {
    %c0_i32 = arith.constant 0 : i32
    %c0_i32_0 = arith.constant 0 : i32
    %c0_i32_1 = arith.constant 0 : i32
    return %c0_i32, %c0_i32_0 : i32, i32
  }
  func.func @transform_7(%arg0: i32) -> (i32, i32) {
    %c0_i32 = arith.constant 0 : i32
    %c0_i32_0 = arith.constant 0 : i32
    return %c0_i32, %arg0 : i32, i32
  }
}

</mosaic_0001>

<bundles_post_ra>
// kernel: mlp_forward.1
= control target key start
LH: loop header
LB: loop body
LE: loop exit
PB: predicated region body
PF: predicated region fallthrough
CT: control target
= control target key end

     0   :  { %vm34_vm0 = vcmask 64512   ;;  %v326_v0 = vmov 0.0   ;;  %vm327_vm1 = vmmov 0   ;;  %v328_v4 = vmov 0   ;;  %s402_s0 = inlined_call_operand.vmem [shape: f32[8,128], index: 0, kind: input, shape index: {}]   ;;  %s403_s1 = inlined_call_operand.vmem [shape: f32[8,8], index: 1, kind: input, shape index: {}]   ;;  %s404_s2 = inlined_call_operand.vmem [shape: f32[8,1], index: 2, kind: input, shape index: {}]   ;;  %s405_s4 = inlined_call_operand.vmem [shape: f32[16,1], index: 4, kind: input, shape index: {}]   ;;  %s406_s3 = inlined_call_operand.vmem [shape: f32[16,8], index: 3, kind: input, shape index: {}]   ;;  %s407_s6 = inlined_call_operand.vmem [shape: f32[8,1], index: 6, kind: input, shape index: {}]   ;;  %s408_s5 = inlined_call_operand.vmem [shape: f32[8,16], index: 5, kind: input, shape index: {}]   ;;  %s409_s7 = inlined_call_operand.vmem [shape: f32[8,128], index: 7, kind: output, shape index: {}]  }
   0x1   :  { %304 = vmatprep.subr.mxu0 %v326_v0  ;;  %v26_v1 = vld [vmem:[%s402_s0] sm:$0xff]  ;;  %306 = vmatprep.mubr.msk.f32.mxu0 %vm327_vm1, %v326_v0  ;;  %v112_v5 = vld [vmem:[%s405_s4 + $0x8] sm:$0xff]  ;;  %vm213_vm2 = vcmask 130048  }
   0x2   :  { %v27_v2 = vld [vmem:[%s403_s1] sm:$0xff]  ;;  %305 = vmatpush3.msra.mxu0 %v26_v1  ;;  %324 = vset.pattern.permute.xlu0 %v328_v4  ;;  %v110_v14 = vld [vmem:[%s406_s3 + $0x8] sm:$0xff] }
   0x3   :  { %v28_v3 = vld [vmem:[%s404_s2] sm:$0xff]  ;;  %307 = vmatmul.mubr.msk.f32.vlgmr.msra.gmra.mxu0 %vm34_vm0, %v27_v2  ;;  %325 = vset.pattern.permute.xlu1 %v328_v4 }
   0x4   :  { %31 = vperm.xlu0 %324, %v28_v3   ;;  %314 = vmatprep.subr.mxu0 %v326_v0  ;;  %v109_v6 = vld [vmem:[%s406_s3] sm:$0xff] }
   0x5   :  { %318 = vmatprep.mubr.msk.f32.mxu0 %vm327_vm1, %v326_v0  ;;  %311 = vmatprep.mubr.msk.f32.mxu1 %vm34_vm0, %v109_v6  ;;  %v111_v7 = vld [vmem:[%s405_s4] sm:$0xff] }
   0x6   :  { %115 = vperm.xlu1 %325, %v111_v7   ;;  %v207_v8 = vld [vmem:[%s407_s6] sm:$0xff] }
   0x7   :  { %v206_v23 = vld [vmem:[%s408_s5] sm:$0xff] }
   0x8   :  { %120 = vperm.xlu0 %324, %v112_v5  }
   0xa   :  { %210 = vperm.xlu1 %325, %v207_v8  }
  0x7f   :  { %v32_v9 = vpop.permute.xlu0 %31 }
  0x81   :  { %v116_v18 = vpop.permute.xlu1 %115 }
  0x83   :  { %v121_v15 = vpop.permute.xlu0 %120 }
  0x85   :  { %v211_v24 = vpop.permute.xlu1 %210 }
  0xc3   :  { %v104_v10 = vpop.f32.mrf.mxu0 }
  0xc4   :  { %v105_v11 = vadd.f32 %v104_v10, %v32_v9 }
  0xc5   :  { %v308_v12 = vpop.f32.mrf.mxu0 }
  0xc6   :  { %v108_v13 = vmax.f32 %v105_v11, 0.0 }
  0xc8   :  { %309 = vmatprep.subr.mxu1 %v108_v13 }
  0xc9   :  { %310 = vmatpush3.msra.mxu1 %v108_v13 }
  0xca   :  { %312 = vmatmul.mubr.msk.f32.vlgmr.msra.gmra.mxu1 %vm34_vm0, %v110_v14 }
 0x18a   :  { %v313_v16 = vpop.f32.mrf.mxu1 }
 0x18b   :  { %v201_v17 = vadd.f32 %v313_v16, %v121_v15 }
 0x18c   :  { %v195_v19 = vpop.f32.mrf.mxu1 }
 0x18d   :  { %v205_v20 = vmax.f32 %v201_v17, 0.0  ;;  %v196_v21 = vadd.f32 %v195_v19, %v116_v18 }
 0x18f   :  { %v204_v22 = vmax.f32 %v196_v21, 0.0  ;;  %315 = vmatpush3.msra.mxu0 %v205_v20 }
 0x190   :  { %316 = vmatprep.subr.mxu0 %v326_v0 }
 0x191   :  { %317 = vmatpush3.msra.mxu0 %v204_v22 }
 0x192   :  { %319 = vmatmul.mubr.msk.f32.vlgmr.msra.gmra.mxu0 %vm213_vm2, %v206_v23 }
 0x252   :  { %v283_v25 = vpop.f32.mrf.mxu0 }
 0x253   :  { %v284_v26 = vadd.f32 %v283_v25, %v211_v24 }
 0x254   :  { %v320_v27 = vpop.f32.mrf.mxu0 }
 0x255   :  { %287 = vst [vmem:[%s409_s7] sm:$0xff] %v284_v26 }

</bundles_post_ra>
